<compile_context>
chip_gen: v6e
topology: v6e:2x2x1
jax: 0.10.0
libtpu: 0.0.40
codegen_flags: <defaults>
</compile_context>

<pallas_src>
import functools

import jax
import jax.numpy as jnp
from jax import lax
from jax.experimental import pallas as pl
from jax.experimental.pallas import tpu as pltpu


def _gcn1_kernel(x_ref, adj_ref, w1_ref, b1_ref, w2_ref, b2_ref, out_ref):
    """One grid step: a (Bb, N, *) block of graphs; parameters fully resident."""
    x = x_ref[...]                                       # (Bb, N, Din)  f32
    adj = adj_ref[...]                                   # (Bb, N, N)    f32
    bb = x.shape[0]

    # Layer-1 feature transform first: depends only on x & w1, so this MXU work
    # overlaps the XLU row-sum + EUP rsqrt of the degree normalization below.
    w1b = jnp.broadcast_to(w1_ref[...], (bb,) + tuple(w1_ref.shape))   # (Bb, Din, H)
    xw = jnp.einsum('bnd,bdh->bnh', x, w1b,
                    preferred_element_type=jnp.float32)                # (Bb, N, H)

    # deg_i = sum_j adj[i, j];  dinv = deg^-0.5 with inf -> 0 (matches torch).
    deg = jnp.sum(adj, axis=2, keepdims=True)                          # (Bb, N, 1)
    dinv = lax.rsqrt(deg)
    dinv = jnp.where(jnp.isinf(dinv), 0.0, dinv)

    # norm_adj @ t == dinv * (adj @ (dinv * t)); norm_adj is never materialized.
    h = jnp.einsum('bnm,bmh->bnh', adj, dinv * xw,
                   preferred_element_type=jnp.float32)
    h = jnp.maximum(dinv * h + b1_ref[...], 0.0)                       # (Bb, N, H)

    # Layer 2: only node rows 0..2 feed the averaged embedding.
    z = jnp.einsum('bnm,bmh->bnh', adj[:, 0:3, :], dinv * h,
                   preferred_element_type=jnp.float32)                 # (Bb, 3, H)
    z = dinv[:, 0:3, :] * z
    w2b = jnp.broadcast_to(w2_ref[...], (bb,) + tuple(w2_ref.shape))   # (Bb, H, P)
    y = jnp.einsum('bnh,bhp->bnp', z, w2b,
                   preferred_element_type=jnp.float32) + b2_ref[...]
    y = jnp.maximum(y, 0.0)                                            # (Bb, 3, P)

    # emd = mean(stack(y0, y1)); emd = mean(stack(emd, y2))
    emd = (y[:, 0:1, :] + y[:, 1:2, :]) * 0.5
    emd = (emd + y[:, 2:3, :]) * 0.5
    out_ref[...] = emd                                                 # (Bb, 1, P) lane-dense


def prepare_params(w1, b1, w2, b2, lane=128):
    """Pad layer-2 params to a lane-dense (multiple of 128) output width.

    Done ONCE at init, outside the jitted per-call path. Zero-padded output
    columns contribute nothing (matmul + bias 0 + ReLU stay 0) and are sliced
    away in the wrapper.
    """
    din, hid = w1.shape
    hid2, dout = w2.shape
    assert hid2 == hid
    p = max(lane, -(-dout // lane) * lane)
    w1_f = jnp.asarray(w1, jnp.float32)
    b1_2d = jnp.asarray(b1, jnp.float32).reshape(1, hid)
    w2_pad = jnp.zeros((hid, p), jnp.float32).at[:, :dout].set(
        jnp.asarray(w2, jnp.float32))
    b2_pad = jnp.zeros((1, p), jnp.float32).at[0, :dout].set(
        jnp.asarray(b2, jnp.float32).reshape(-1))
    return w1_f, b1_2d, w2_pad, b2_pad


def _gcn1_pallas(x, adj, w1, b1_2d, w2_pad, b2_pad, *, block_b):
    b, n, din = x.shape
    hid = w1.shape[1]
    p = w2_pad.shape[1]
    if b % block_b != 0:
        raise ValueError(f"batch {b} must be a multiple of block_b {block_b}")
    grid = (b // block_b,)
    return pl.pallas_call(
        _gcn1_kernel,
        grid=grid,
        in_specs=[
            pl.BlockSpec((block_b, n, din), lambda i: (i, 0, 0)),   # x
            pl.BlockSpec((block_b, n, n), lambda i: (i, 0, 0)),     # adj
            pl.BlockSpec((din, hid), lambda i: (0, 0)),             # w1
            pl.BlockSpec((1, hid), lambda i: (0, 0)),               # b1
            pl.BlockSpec((hid, p), lambda i: (0, 0)),               # w2 (lane-padded)
            pl.BlockSpec((1, p), lambda i: (0, 0)),                 # b2 (lane-padded)
        ],
        out_specs=pl.BlockSpec((block_b, 1, p), lambda i: (i, 0, 0)),
        out_shape=jax.ShapeDtypeStruct((b, 1, p), jnp.float32),
        compiler_params=pltpu.CompilerParams(
            dimension_semantics=("parallel",)),
    )(x.astype(jnp.float32), adj.astype(jnp.float32), w1, b1_2d, w2_pad, b2_pad)


def gcn1_forward_batched(x, adj, w1, b1_2d, w2_pad, b2_pad, *, block_b, out_dim):
    """x: (B, N, Din); adj: (B, N, N); params from prepare_params. Returns (B, Dout)."""
    out = _gcn1_pallas(x, adj, w1, b1_2d, w2_pad, b2_pad, block_b=block_b)
    return out[:, 0, :out_dim]


def gcn1_forward(x, adj, w1, b1, w2, b2):
    """Single-graph forward matching torch GCN1.forward(x, adj) -> (output_dim,)."""
    params = prepare_params(w1, b1, w2, b2)   # convenience path; batched API is the hot path
    out = _gcn1_pallas(x[None], adj[None], *params, block_b=1)
    return out[0, 0, :w2.shape[1]]


def _reference_batched(x, adj, w1, b1, w2, b2):
    """Pure-JAX transcription of the torch GCN1 module, vmapped over graphs."""
    def conv(h, a, w, bias):
        deg_inv_sqrt = jnp.power(jnp.sum(a, axis=1), -0.5)
        deg_inv_sqrt = jnp.where(jnp.isinf(deg_inv_sqrt), 0.0, deg_inv_sqrt)
        norm_adj = a * deg_inv_sqrt[:, None] * deg_inv_sqrt[None, :]
        return jax.nn.relu(norm_adj @ h @ w + bias)

    def single(xg, ag):
        h = conv(xg, ag, w1, b1)
        y = conv(h, ag, w2, b2)
        emd = (y[0] + y[1]) * 0.5
        return (emd + y[2]) * 0.5

    return jax.vmap(single)(x, adj)


if __name__ == "__main__":
    N, INPUT_DIM, HIDDEN_DIM, OUTPUT_DIM = 8, 16, 32, 16
    B, BLOCK_B = 16, 8

    key = jax.random.PRNGKey(0)
    kx, ka, kw1, kb1, kw2, kb2 = jax.random.split(key, 6)

    x = jax.random.normal(kx, (B, N, INPUT_DIM), dtype=jnp.float32)
    adj = jax.random.uniform(ka, (B, N, N), dtype=jnp.float32)
    adj = 0.5 * (adj + jnp.swapaxes(adj, 1, 2))     # symmetric, non-negative adjacency

    # nn.Linear params, stored pre-transposed as (in, out); biases 1-D (out,).
    w1 = jax.random.normal(kw1, (INPUT_DIM, HIDDEN_DIM), dtype=jnp.float32) * 0.1
    b1 = jax.random.normal(kb1, (HIDDEN_DIM,), dtype=jnp.float32) * 0.1
    w2 = jax.random.normal(kw2, (HIDDEN_DIM, OUTPUT_DIM), dtype=jnp.float32) * 0.1
    b2 = jax.random.normal(kb2, (OUTPUT_DIM,), dtype=jnp.float32) * 0.1

    # Parameter padding is done ONCE here, outside the jitted per-call path.
    params = prepare_params(w1, b1, w2, b2)

    fwd = jax.jit(gcn1_forward_batched, static_argnames=("block_b", "out_dim"))
    emd = fwd(x, adj, *params, block_b=BLOCK_B, out_dim=OUTPUT_DIM)
    jax.block_until_ready(emd)
    assert emd.shape == (B, OUTPUT_DIM)

    # Single-graph call matching the torch module's signature.
    emd0 = jax.block_until_ready(gcn1_forward(x[0], adj[0], w1, b1, w2, b2))
    assert emd0.shape == (OUTPUT_DIM,)

    # Correctness vs a pure-JAX transcription of the torch module.
    ref = _reference_batched(x, adj, w1, b1, w2, b2)
    err = float(jnp.max(jnp.abs(emd - ref)))
    err0 = float(jnp.max(jnp.abs(emd0 - ref[0])))
    assert err < 1e-2, f"batched max abs error {err}"
    assert err0 < 1e-2, f"single-graph max abs error {err0}"
    print("KERNEL_OK")
</pallas_src>

<mosaic_0001>
module attributes {stable_mosaic.version = 11 : i64} {
  func.func @_gcn1_kernel(%arg0: i32, %arg1: memref<8x8x16xf32, #tpu.memory_space<vmem>>, %arg2: memref<8x8x8xf32, #tpu.memory_space<vmem>>, %arg3: memref<16x32xf32, #tpu.memory_space<vmem>>, %arg4: memref<1x32xf32, #tpu.memory_space<vmem>>, %arg5: memref<32x128xf32, #tpu.memory_space<vmem>>, %arg6: memref<1x128xf32, #tpu.memory_space<vmem>>, %arg7: memref<8x1x128xf32, #tpu.memory_space<vmem>>) attributes {dimension_semantics = [#tpu.dimension_semantics<parallel>], iteration_bounds = array<i64: 2>, scalar_prefetch = 0 : i64, scratch_operands = 0 : i64, tpu.core_type = #tpu.core_type<tc>, window_params = [{transform_indices = @transform_0, window_bounds = array<i64: 8, 8, 16>}, {transform_indices = @transform_1, window_bounds = array<i64: 8, 8, 8>}, {pipeline_mode = #tpu.pipeline_mode<synchronous>, transform_indices = @transform_2, window_bounds = array<i64: 16, 32>}, {pipeline_mode = #tpu.pipeline_mode<synchronous>, transform_indices = @transform_3, window_bounds = array<i64: 1, 32>}, {pipeline_mode = #tpu.pipeline_mode<synchronous>, transform_indices = @transform_4, window_bounds = array<i64: 32, 128>}, {pipeline_mode = #tpu.pipeline_mode<synchronous>, transform_indices = @transform_5, window_bounds = array<i64: 1, 128>}, {transform_indices = @transform_6, window_bounds = array<i64: 8, 1, 128>}]} {
    %c0 = arith.constant 0 : index
    %c0_0 = arith.constant 0 : index
    %c0_1 = arith.constant 0 : index
    %0 = vector.load %arg1[%c0, %c0_0, %c0_1] : memref<8x8x16xf32, #tpu.memory_space<vmem>>, vector<8x8x16xf32>
    %c0_2 = arith.constant 0 : index
    %c0_3 = arith.constant 0 : index
    %c0_4 = arith.constant 0 : index
    %1 = vector.load %arg2[%c0_2, %c0_3, %c0_4] : memref<8x8x8xf32, #tpu.memory_space<vmem>>, vector<8x8x8xf32>
    %c0_5 = arith.constant 0 : index
    %c0_6 = arith.constant 0 : index
    %2 = vector.load %arg3[%c0_5, %c0_6] : memref<16x32xf32, #tpu.memory_space<vmem>>, vector<16x32xf32>
    %3 = vector.shape_cast %2 : vector<16x32xf32> to vector<1x16x32xf32>
    %4 = vector.broadcast %3 : vector<1x16x32xf32> to vector<8x16x32xf32>
    "tpu.trace_start"() <{level = 10 : i32, message = "bnd,bdh->bnh"}> : () -> ()
    %cst = arith.constant dense<0.000000e+00> : vector<8x8x32xf32>
    %5 = tpu.matmul %0, %4, %cst {dimension_numbers = #tpu.dot_dimension_numbers<[2], [1], [1], [2], [0, 0, 0, 1, 1, 2], [0], [0]>} : vector<8x8x16xf32>, vector<8x16x32xf32>, vector<8x8x32xf32> -> vector<8x8x32xf32>
    "tpu.trace_stop"() : () -> ()
    %cst_7 = arith.constant dense<0.000000e+00> : vector<8x8xf32>
    %6 = vector.multi_reduction <add>, %1, %cst_7 [2] : vector<8x8x8xf32> to vector<8x8xf32>
    %7 = vector.shape_cast %6 : vector<8x8xf32> to vector<8x8x1xf32>
    %8 = math.rsqrt %7 : vector<8x8x1xf32>
    %9 = math.absf %8 : vector<8x8x1xf32>
    %cst_8 = arith.constant 0x7F800000 : f32
    %10 = vector.broadcast %cst_8 : f32 to vector<8x8x1xf32>
    %11 = arith.cmpf oeq, %9, %10 : vector<8x8x1xf32>
    %cst_9 = arith.constant 0.000000e+00 : f32
    %12 = vector.broadcast %cst_9 : f32 to vector<8x8x1xf32>
    %13 = arith.select %11, %12, %8 : vector<8x8x1xi1>, vector<8x8x1xf32>
    %14 = vector.broadcast %13 : vector<8x8x1xf32> to vector<8x8x32xf32>
    %15 = arith.mulf %14, %5 : vector<8x8x32xf32>
    "tpu.trace_start"() <{level = 10 : i32, message = "bnm,bmh->bnh"}> : () -> ()
    %cst_10 = arith.constant dense<0.000000e+00> : vector<8x8x32xf32>
    %16 = tpu.matmul %1, %15, %cst_10 {dimension_numbers = #tpu.dot_dimension_numbers<[2], [1], [1], [2], [0, 0, 0, 1, 1, 2], [0], [0]>} : vector<8x8x8xf32>, vector<8x8x32xf32>, vector<8x8x32xf32> -> vector<8x8x32xf32>
    "tpu.trace_stop"() : () -> ()
    %17 = vector.broadcast %13 : vector<8x8x1xf32> to vector<8x8x32xf32>
    %18 = arith.mulf %17, %16 : vector<8x8x32xf32>
    %c0_11 = arith.constant 0 : index
    %c0_12 = arith.constant 0 : index
    %19 = vector.load %arg4[%c0_11, %c0_12] : memref<1x32xf32, #tpu.memory_space<vmem>>, vector<1x32xf32>
    %20 = vector.shape_cast %19 : vector<1x32xf32> to vector<1x1x32xf32>
    %21 = vector.broadcast %20 : vector<1x1x32xf32> to vector<8x8x32xf32>
    %22 = arith.addf %18, %21 : vector<8x8x32xf32>
    %cst_13 = arith.constant 0.000000e+00 : f32
    %23 = vector.broadcast %cst_13 : f32 to vector<8x8x32xf32>
    %24 = arith.maximumf %22, %23 : vector<8x8x32xf32>
    %25 = vector.extract_strided_slice %1 {offsets = [0, 0, 0], sizes = [8, 3, 8], strides = [1, 1, 1]} : vector<8x8x8xf32> to vector<8x3x8xf32>
    %26 = vector.broadcast %13 : vector<8x8x1xf32> to vector<8x8x32xf32>
    %27 = arith.mulf %26, %24 : vector<8x8x32xf32>
    "tpu.trace_start"() <{level = 10 : i32, message = "bnm,bmh->bnh"}> : () -> ()
    %cst_14 = arith.constant dense<0.000000e+00> : vector<8x3x32xf32>
    %28 = tpu.matmul %25, %27, %cst_14 {dimension_numbers = #tpu.dot_dimension_numbers<[2], [1], [1], [2], [0, 0, 0, 1, 1, 2], [0], [0]>} : vector<8x3x8xf32>, vector<8x8x32xf32>, vector<8x3x32xf32> -> vector<8x3x32xf32>
    "tpu.trace_stop"() : () -> ()
    %29 = vector.extract_strided_slice %13 {offsets = [0, 0, 0], sizes = [8, 3, 1], strides = [1, 1, 1]} : vector<8x8x1xf32> to vector<8x3x1xf32>
    %30 = vector.broadcast %29 : vector<8x3x1xf32> to vector<8x3x32xf32>
    %31 = arith.mulf %30, %28 : vector<8x3x32xf32>
    %c0_15 = arith.constant 0 : index
    %c0_16 = arith.constant 0 : index
    %32 = vector.load %arg5[%c0_15, %c0_16] : memref<32x128xf32, #tpu.memory_space<vmem>>, vector<32x128xf32>
    %33 = vector.shape_cast %32 : vector<32x128xf32> to vector<1x32x128xf32>
    %34 = vector.broadcast %33 : vector<1x32x128xf32> to vector<8x32x128xf32>
    "tpu.trace_start"() <{level = 10 : i32, message = "bnh,bhp->bnp"}> : () -> ()
    %cst_17 = arith.constant dense<0.000000e+00> : vector<8x3x128xf32>
    %35 = tpu.matmul %31, %34, %cst_17 {dimension_numbers = #tpu.dot_dimension_numbers<[2], [1], [1], [2], [0, 0, 0, 1, 1, 2], [0], [0]>} : vector<8x3x32xf32>, vector<8x32x128xf32>, vector<8x3x128xf32> -> vector<8x3x128xf32>
    "tpu.trace_stop"() : () -> ()
    %c0_18 = arith.constant 0 : index
    %c0_19 = arith.constant 0 : index
    %36 = vector.load %arg6[%c0_18, %c0_19] : memref<1x128xf32, #tpu.memory_space<vmem>>, vector<1x128xf32>
    %37 = vector.shape_cast %36 : vector<1x128xf32> to vector<1x1x128xf32>
    %38 = vector.broadcast %37 : vector<1x1x128xf32> to vector<8x3x128xf32>
    %39 = arith.addf %35, %38 : vector<8x3x128xf32>
    %cst_20 = arith.constant 0.000000e+00 : f32
    %40 = vector.broadcast %cst_20 : f32 to vector<8x3x128xf32>
    %41 = arith.maximumf %39, %40 : vector<8x3x128xf32>
    %42 = vector.extract_strided_slice %41 {offsets = [0, 0, 0], sizes = [8, 1, 128], strides = [1, 1, 1]} : vector<8x3x128xf32> to vector<8x1x128xf32>
    %43 = vector.extract_strided_slice %41 {offsets = [0, 1, 0], sizes = [8, 1, 128], strides = [1, 1, 1]} : vector<8x3x128xf32> to vector<8x1x128xf32>
    %44 = arith.addf %42, %43 : vector<8x1x128xf32>
    %cst_21 = arith.constant 5.000000e-01 : f32
    %45 = vector.broadcast %cst_21 : f32 to vector<8x1x128xf32>
    %46 = arith.mulf %44, %45 : vector<8x1x128xf32>
    %47 = vector.extract_strided_slice %41 {offsets = [0, 2, 0], sizes = [8, 1, 128], strides = [1, 1, 1]} : vector<8x3x128xf32> to vector<8x1x128xf32>
    %48 = arith.addf %46, %47 : vector<8x1x128xf32>
    %cst_22 = arith.constant 5.000000e-01 : f32
    %49 = vector.broadcast %cst_22 : f32 to vector<8x1x128xf32>
    %50 = arith.mulf %48, %49 : vector<8x1x128xf32>
    %c0_23 = arith.constant 0 : index
    %c0_24 = arith.constant 0 : index
    %c0_25 = arith.constant 0 : index
    %51 = vector.load %arg7[%c0_23, %c0_24, %c0_25] : memref<8x1x128xf32, #tpu.memory_space<vmem>>, vector<8x1x128xf32>
    tpu.vector_store %arg7[%c0_23, %c0_24, %c0_25], %50 {strides = array<i32>} : memref<8x1x128xf32, #tpu.memory_space<vmem>>, vector<8x1x128xf32>,
    return
  }
  func.func @transform_0(%arg0: i32) -> (i32, i32, i32) {
    %c0_i32 = arith.constant 0 : i32
    %c0_i32_0 = arith.constant 0 : i32
    %c0_i32_1 = arith.constant 0 : i32
    return %arg0, %c0_i32, %c0_i32_0 : i32, i32, i32
  }
  func.func @transform_1(%arg0: i32) -> (i32, i32, i32) {
    %c0_i32 = arith.constant 0 : i32
    %c0_i32_0 = arith.constant 0 : i32
    %c0_i32_1 = arith.constant 0 : i32
    return %arg0, %c0_i32, %c0_i32_0 : i32, i32, i32
  }
  func.func @transform_2(%arg0: i32) -> (i32, i32) {
    %c0_i32 = arith.constant 0 : i32
    %c0_i32_0 = arith.constant 0 : i32
    %c0_i32_1 = arith.constant 0 : i32
    return %c0_i32, %c0_i32_0 : i32, i32
  }
  func.func @transform_3(%arg0: i32) -> (i32, i32) {
    %c0_i32 = arith.constant 0 : i32
    %c0_i32_0 = arith.constant 0 : i32
    %c0_i32_1 = arith.constant 0 : i32
    return %c0_i32, %c0_i32_0 : i32, i32
  }
  func.func @transform_4(%arg0: i32) -> (i32, i32) {
    %c0_i32 = arith.constant 0 : i32
    %c0_i32_0 = arith.constant 0 : i32
    %c0_i32_1 = arith.constant 0 : i32
    return %c0_i32, %c0_i32_0 : i32, i32
  }
  func.func @transform_5(%arg0: i32) -> (i32, i32) {
    %c0_i32 = arith.constant 0 : i32
    %c0_i32_0 = arith.constant 0 : i32
    %c0_i32_1 = arith.constant 0 : i32
    return %c0_i32, %c0_i32_0 : i32, i32
  }
  func.func @transform_6(%arg0: i32) -> (i32, i32, i32) {
    %c0_i32 = arith.constant 0 : i32
    %c0_i32_0 = arith.constant 0 : i32
    %c0_i32_1 = arith.constant 0 : i32
    return %arg0, %c0_i32, %c0_i32_0 : i32, i32, i32
  }
}

</mosaic_0001>

<bundles_post_ra>
// kernel: gcn1_forward_batched.1
= control target key start
LH: loop header
LB: loop body
LE: loop exit
PB: predicated region body
PF: predicated region fallthrough
CT: control target
= control target key end

     0   :  { %11 = vsyncpa [#allocation3], 0  ;;  %s3922_s0 = inlined_call_operand.vmem [shape: f32[16,8,16], index: 0, kind: input, shape index: {}]   ;;  %s3923_s1 = inlined_call_operand.vmem [shape: f32[16,8,8], index: 1, kind: input, shape index: {}]   ;;  %s3924_s2 = inlined_call_operand.vmem [shape: f32[16,32], index: 2, kind: input, shape index: {}]   ;;  %s3925_s3 = inlined_call_operand.vmem [shape: f32[1,32], index: 3, kind: input, shape index: {}]   ;;  %s3926_s4 = inlined_call_operand.vmem [shape: f32[32,128], index: 4, kind: input, shape index: {}]   ;;  %s3927_s5 = inlined_call_operand.vmem [shape: f32[1,128], index: 5, kind: input, shape index: {}]   ;;  %s3928_s6 = inlined_call_operand.hbm [shape: f32[16,1,128], index: 6, kind: output, shape index: {}]  }
   0x1   :  { %13 = vsyncpa [#allocation3 + $0x1], 0  ;;  %s3436_s21 = smov 0   ;;  %s3438_s22 = smov 0  }
   0x2   :  { %s3440_s23 = smov 0   ;;  %s3442_s24 = smov 0  }
   0x3 LB: > { %s3457_s25 = sadd.s32 4294967295, %s3394_s24   ;;  %s2906_s26 = sadd.s32 4294967294, %s3394_s24   ;;  %s3394_s24 = sphi %s3442_s24, %s3934_s24   ;;  %s3390_s23 = sphi %s3440_s23, %s3933_s23   ;;  %s3386_s22 = sphi %s3438_s22, %s3932_s22   ;;  %s3382_s21 = sphi %s3436_s21, %s3931_s21  }
   0x4   : > { %s3461_s27 = sadd.s32 1, %s3394_s24   ;;  %s162_s28 = sadd.s32 1, %s3390_s23 }
   0x5   : > { %s159_s29 = ssub.s32 %s3394_s24, %s3461_s27  ;;  %p172_p0 = scmp.ne.s32.totalorder %s3390_s23, %s3386_s22 }
   0x6   : > { %p160_p1 = scmp.eq.s32.totalorder %s159_s29, 0  ;;  %p173_p2 = scmp.eq.s32.totalorder %s3457_s25, 1 }
   0x7   : > { %p178_p3 = scmp.ne.s32.totalorder %s3386_s22, %s3382_s21  ;;  %p179_p4 = scmp.eq.s32.totalorder %s2906_s26, 1 }
   0x8   : > { %s3472_s30 = scalar_select %p160_p1, %s3390_s23, %s162_s28  }
   0x9   : > { %p3474_p5 = por %p173_p2, %p172_p0  ;;  %p3478_p6 = por %p179_p4, %p178_p3 }
   0xa   : > { %p2909_p7 = scmp.ge.s32.totalorder %s3394_s24, 1  ;;  %p227_p8 = scmp.lt.s32.totalorder %s3394_s24, 3 }
   0xc   : > { %p228_p9 = pnand %p2909_p7, %p227_p8 }
   0xd   : > { %s2911_s11 = sshll.u32 (!%p228_p9), %s3457_s25, 3  ;;  %s259_s18 = sand.u32 (!%p228_p9), 1, %s3386_s22  }
   0xe   : > { %231 = sbr.rel (%p228_p9) target bundleno = 869 (0x365), region = 44  ;;  %p263_p10 = scmp.lt.s32.totalorder (!%p228_p9), %s2911_s11, 15 }
   0xf   : > { %s2910_s19 = sshll.u32 (!%p228_p9), %s259_s18, 3  ;;  %s2954_s26 = sshll.u32 (!%p228_p9), %s3457_s25, 7 }
  0x10   : > { %s3874_s10 = scalar_lea.hbm (!%p228_p9), %s3928_s6, %s2954_s26  ;;  %s3398_s12 = smov (!%p228_p9), [#allocation2]  }
  0x11   : > { %s3338_s13 = sshll.u32 (!%p228_p9), %s3398_s12, 4  ;;  %s3339_s13 = int_to_ptr.vmem [resolvable:$false] %s3338_s13 }
  0x13   : > { %v292_v0 = vld [vmem:[%s3924_s2 + $0x8] sm:$0xff]  ;;  %v3396_v1 = vmov 0.0   ;;  %v3493_v2 = vld [vmem:[%s3924_s2] sm:$0xff]  ;;  %s3936_s11 = smov (!%p263_p10, %s2911_s11), 15  ;;  %vm3397_vm0 = vmmov 0   ;;  %vm293_vm1 = vcmask 130048  }
  0x14   : > { %3051 = vmatprep.subr.mxu0 %v3396_v1  ;;  %3058 = vmatprep.subr.mxu1 %v3396_v1  ;;  %s2912_s14 = sshll.u32 %s3936_s11, 3  ;;  %vm878_vm2 = vcmask 64512   ;;  %vm2145_vm11 = vcmask 261120   ;;  %s3882_s11 = scalar_lea.sflag [#allocation3], %s259_s18 }
  0x15   : > { %3052 = vmatpush3.msra.mxu0 %v292_v0  ;;  %3059 = vmatpush3.msra.mxu1 %v292_v0  ;;  %s3511_s17 = scalar_lea.vmem %s3922_s0, %s2912_s14  ;;  %s3545_s20 = scalar_lea.vmem %s3923_s1, %s2912_s14 }
  0x16   : > { %3053 = vmatprep.subr.mxu0 %v3396_v1  ;;  %3060 = vmatprep.subr.mxu1 %v3396_v1  ;;  %v275_v3 = vld [vmem:[%s3511_s17] sm:$0xff]  ;;  %v276_v4 = vld [vmem:[%s3511_s17 + $0x8] sm:$0xff]  ;;  %v277_v5 = vld [vmem:[%s3511_s17 + $0x10] sm:$0xff]  ;;  %s3340_s14 = scalar_lea.vmem %s3339_s13, 256 }
  0x17   : > { %3054 = vmatpush3.msra.mxu0 %v3493_v2  ;;  %3055 = vmatprep.mubr.msk.f32.mxu0 %vm3397_vm0, %v3396_v1  ;;  %v278_v6 = vld [vmem:[%s3511_s17 + $0x18] sm:$0xff]  ;;  %v279_v7 = vld [vmem:[%s3511_s17 + $0x20] sm:$0xff]  ;;  %v280_v8 = vld [vmem:[%s3511_s17 + $0x28] sm:$0xff] }
  0x18   : > { %3061 = vmatpush3.msra.mxu1 %v3493_v2  ;;  %3062 = vmatprep.mubr.msk.f32.mxu1 %vm3397_vm0, %v3396_v1  ;;  %v3555_v9 = vld [vmem:[%s3545_s20] sm:$0xff]  ;;  %v3558_v10 = vld [vmem:[%s3545_s20 + $0x10] sm:$0xff]  ;;  %v282_v12 = vld [vmem:[%s3511_s17 + $0x38] sm:$0xff] }
  0x19   : > { %3065 = vmatprep.subr.mxu0 %v3396_v1  ;;  %3072 = vmatprep.subr.mxu1 %v3396_v1  ;;  %v281_v11 = vld [vmem:[%s3511_s17 + $0x30] sm:$0xff]  ;;  %v879_v13 = vsel %vm878_vm2, %v3555_v9, 0.0  ;;  %v885_v14 = vsel %vm878_vm2, %v3558_v10, 0.0  ;;  %v3575_v15 = vld [vmem:[%s3545_s20 + $0x8] sm:$0xff]  ;;  %v3578_v16 = vld [vmem:[%s3545_s20 + $0x18] sm:$0xff] }
  0x1a   : > { %3056 = vmatmul.mubr.msk.f32.vlgmr.msra.gmra.mxu0 %vm293_vm1, %v275_v3  ;;  %3063 = vmatmul.mubr.msk.f32.vlgmr.msra.gmra.mxu1 %vm293_vm1, %v276_v4  ;;  %v882_v17 = vsel %vm878_vm2, %v3575_v15, 0.0  ;;  %v888_v18 = vsel %vm878_vm2, %v3578_v16, 0.0  ;;  %v3589_v19 = vld [vmem:[%s3545_s20 + $0x28] sm:$0xff]  ;;  %v3592_v20 = vld [vmem:[%s3545_s20 + $0x20] sm:$0xff]  ;;  %v3603_v23 = vld [vmem:[%s3545_s20 + $0x38] sm:$0xff] }
  0x1b   : > { %3066 = vmatpush3.msra.mxu0 %v292_v0  ;;  %3073 = vmatpush3.msra.mxu1 %v292_v0  ;;  %v894_v21 = vsel %vm878_vm2, %v3589_v19, 0.0  ;;  %v891_v22 = vsel %vm878_vm2, %v3592_v20, 0.0  ;;  %v3606_v24 = vld [vmem:[%s3545_s20 + $0x30] sm:$0xff]  ;;  %v900_v25 = vsel %vm878_vm2, %v3603_v23, 0.0  ;;  %s3857_s20 = scalar_lea.vmem [#allocation2], %s2910_s19 }
  0x1c   : > { %3067 = vmatprep.subr.mxu0 %v3396_v1  ;;  %3074 = vmatprep.subr.mxu1 %v3396_v1  ;;  %v897_v26 = vsel %vm878_vm2, %v3606_v24, 0.0  ;;  %s2832_s28 = sshll.u32 %s3857_s20, 4  ;;  %s3876_s28 = int_to_ptr.vmem [resolvable:$true] %s2832_s28 }
  0x1d   : > { %3068 = vmatpush3.msra.mxu0 %v3493_v2  ;;  %3069 = vmatprep.mubr.msk.f32.mxu0 %vm3397_vm0, %v3396_v1  ;;  %s3334_s25 = scalar_lea.vmem %s3876_s28, 128  ;;  %p3341_p0 = scmp.lt.s32.totalorder %s3876_s28, %s3339_s13 }
  0x1e   : > { %3075 = vmatpush3.msra.mxu1 %v3493_v2  ;;  %3076 = vmatprep.mubr.msk.f32.mxu1 %vm3397_vm0, %v3396_v1  ;;  %p3335_p11 = scmp.ne.s32.totalorder %s3876_s28, %s3334_s25  ;;  %p3342_p1 = scmp.lt.s32.totalorder %s3340_s14, %s3334_s25 }
  0x1f   : > { %3070 = vmatmul.mubr.msk.f32.vlgmr.msra.gmra.mxu0 %vm293_vm1, %v277_v5  ;;  %3077 = vmatmul.mubr.msk.f32.vlgmr.msra.gmra.mxu1 %vm293_vm1, %v278_v6 }
  0x20   : > { %3079 = vmatprep.subr.mxu0 %v3396_v1  ;;  %3086 = vmatprep.subr.mxu1 %v3396_v1  ;;  %p3336_p12 = pnand %p3335_p11, %p3474_p5  ;;  %p3343_p2 = por %p3342_p1, %p3341_p0 }
  0x21   : > { %3080 = vmatpush3.msra.mxu0 %v292_v0  ;;  %3087 = vmatpush3.msra.mxu1 %v292_v0 }
  0x22   : > { %3081 = vmatprep.subr.mxu0 %v3396_v1  ;;  %3088 = vmatprep.subr.mxu1 %v3396_v1  ;;  %p3337_p13 = pneg %p3336_p12 }
  0x23   : > { %3082 = vmatpush3.msra.mxu0 %v3493_v2  ;;  %3083 = vmatprep.mubr.msk.f32.mxu0 %vm3397_vm0, %v3396_v1 }
  0x24   : > { %3089 = vmatpush3.msra.mxu1 %v3493_v2  ;;  %3090 = vmatprep.mubr.msk.f32.mxu1 %vm3397_vm0, %v3396_v1  ;;  %p3344_p3 = pnand %p3343_p2, %p3337_p13 }
  0x25   : > { %3084 = vmatmul.mubr.msk.f32.vlgmr.msra.gmra.mxu0 %vm293_vm1, %v279_v7  ;;  %3091 = vmatmul.mubr.msk.f32.vlgmr.msra.gmra.mxu1 %vm293_vm1, %v280_v8 }
  0x26   : > { %3093 = vmatprep.subr.mxu0 %v3396_v1  ;;  %3100 = vmatprep.subr.mxu1 %v3396_v1 }
  0x27   : > { %3094 = vmatpush3.msra.mxu0 %v292_v0  ;;  %3101 = vmatpush3.msra.mxu1 %v292_v0 }
  0x28   : > { %3095 = vmatprep.subr.mxu0 %v3396_v1  ;;  %3102 = vmatprep.subr.mxu1 %v3396_v1 }
  0x29   : > { %3096 = vmatpush3.msra.mxu0 %v3493_v2  ;;  %3097 = vmatprep.mubr.msk.f32.mxu0 %vm3397_vm0, %v3396_v1 }
  0x2a   : > { %3103 = vmatpush3.msra.mxu1 %v3493_v2  ;;  %3104 = vmatprep.mubr.msk.f32.mxu1 %vm3397_vm0, %v3396_v1 }
  0x2b   : > { %3098 = vmatmul.mubr.msk.f32.vlgmr.msra.gmra.mxu0 %vm293_vm1, %v281_v11  ;;  %3105 = vmatmul.mubr.msk.f32.vlgmr.msra.gmra.mxu1 %vm293_vm1, %v282_v12 }
  0x2c   : > { %880 = vadd.xlane.f32.xlu0 %v879_v13  ;;  %886 = vadd.xlane.f32.xlu1 %v885_v14 }
  0x2d   : > { %3107 = vmatprep.subr.mxu0 %v3396_v1  ;;  %3112 = vmatprep.subr.mxu1 %v3396_v1 }
  0x2e   : > { %3109 = vmatprep.mubr.msk.f32.mxu0 %vm3397_vm0, %v3396_v1  ;;  %3114 = vmatprep.mubr.msk.f32.mxu1 %vm3397_vm0, %v3396_v1 }
  0x30   : > { %883 = vadd.xlane.f32.xlu0 %v882_v17  ;;  %889 = vadd.xlane.f32.xlu1 %v888_v18 }
  0x34   : > { %895 = vadd.xlane.f32.xlu1 %v894_v21  ;;  %892 = vadd.xlane.f32.xlu0 %v891_v22 }
  0x38   : > { %901 = vadd.xlane.f32.xlu1 %v900_v25  ;;  %898 = vadd.xlane.f32.xlu0 %v897_v26 }
  0xb5   : > { %v881_v27 = vpop.xlane.xlu0 %880  ;;  %v887_v28 = vpop.xlane.xlu1 %886 }
  0xb6   : > { %3318 = vrsqrt.f32 %v881_v27 }
  0xb9   : > { %v884_v29 = vpop.xlane.xlu0 %883  ;;  %v890_v30 = vpop.xlane.xlu1 %889 }
  0xba   : > { %3320 = vrsqrt.f32 %v884_v29  ;;  %v2931_v29 = vld [vmem:[%s3925_s3] ss:$0 sm:$0xff] }
  0xbb   : > { %3322 = vrsqrt.f32 %v890_v30 }
  0xbc   : > { %3324 = vrsqrt.f32 %v887_v28 }
  0xbd   : > { %v896_v31 = vpop.xlane.xlu1 %895  ;;  %v893_v32 = vpop.xlane.xlu0 %892 }
  0xbe   : > { %3326 = vrsqrt.f32 %v896_v31 }
  0xbf   : > { %3328 = vrsqrt.f32 %v893_v32 }
  0xc1   : > { %v902_v33 = vpop.xlane.xlu1 %901  ;;  %v899_v35 = vpop.xlane.xlu0 %898 }
  0xc2   : > { %3330 = vrsqrt.f32 %v902_v33 }
  0xc3   : > { %v3319_v34 = vpop.eup %3318  ;;  %3332 = vrsqrt.f32 %v899_v35 }
  0xc4   : > { %v911_v38 = vand.u32 2147483647, %v3319_v34 }
  0xc6   : > { %vm919_vm3 = vcmp.eq.f32.partialorder %v911_v38, inf }
  0xc7   : > { %v3321_v36 = vpop.eup %3320  ;;  %v3612_v46 = vsel %vm919_vm3, 0.0, %v3319_v34 }
  0xc8   : > { %v3323_v37 = vpop.eup %3322  ;;  %v912_v39 = vand.u32 2147483647, %v3321_v36 }
  0xc9   : > { %v3325_v40 = vpop.eup %3324  ;;  %v914_v41 = vand.u32 2147483647, %v3323_v37 }
  0xca   : > { %vm920_vm4 = vcmp.eq.f32.partialorder %v912_v39, inf  ;;  %v913_v43 = vand.u32 2147483647, %v3325_v40 }
  0xcb   : > { %v3327_v42 = vpop.eup %3326  ;;  %v3614_v48 = vsel %vm920_vm4, 0.0, %v3321_v36  ;;  %vm922_vm5 = vcmp.eq.f32.partialorder %v914_v41, inf }
  0xcc   : > { %v3329_v44 = vpop.eup %3328  ;;  %vm921_vm6 = vcmp.eq.f32.partialorder %v913_v43, inf  ;;  %v916_v54 = vand.u32 2147483647, %v3327_v42  ;;  %v3618_v55 = vsel %vm922_vm5, 0.0, %v3323_v37 }
  0xcd   : > { %v915_v53 = vand.u32 2147483647, %v3329_v44  ;;  %v3624_v59 = vsel %vm921_vm6, 0.0, %v3325_v40 }
  0xce   : > { %vm924_vm8 = vcmp.eq.f32.partialorder %v916_v54, inf }
  0xcf   : > { %v3331_v56 = vpop.eup %3330  ;;  %vm923_vm7 = vcmp.eq.f32.partialorder %v915_v53, inf  ;;  %v3636_v5 = vsel %vm924_vm8, 0.0, %v3327_v42 }
  0xd0   : > { %v3333_v57 = vpop.eup %3332  ;;  %v918_v3 = vand.u32 2147483647, %v3331_v56  ;;  %v3634_v4 = vsel %vm923_vm7, 0.0, %v3329_v44 }
  0xd1   : > { %v917_v2 = vand.u32 2147483647, %v3333_v57 }
  0xd2   : > { %vm926_vm10 = vcmp.eq.f32.partialorder %v918_v3, inf }
  0xd3   : > { %vm925_vm9 = vcmp.eq.f32.partialorder %v917_v2, inf  ;;  %v3652_v17 = vsel %vm926_vm10, 0.0, %v3331_v56 }
  0xd4   : > { %v3650_v14 = vsel %vm925_vm9, 0.0, %v3333_v57 }
  0xda   : > { %v363_v45 = vpop.f32.mrf.mxu0  ;;  %v436_v47 = vpop.f32.mrf.mxu1 }
  0xdb   : > { %v935_v49 = vmul.f32 %v3612_v46, %v363_v45  ;;  %v936_v50 = vmul.f32 %v3614_v48, %v436_v47 }
  0xdc   : > { %v3057_v51 = vpop.f32.mrf.mxu0  ;;  %v3064_v52 = vpop.f32.mrf.mxu1 }
  0xdd   : > { %3108 = vmatpush3.msra.mxu0 %v935_v49  ;;  %3113 = vmatpush3.msra.mxu1 %v936_v50 }
  0xde   : > { %3110 = vmatmul.mubr.msk.f32.vlgmr.msra.gmra.mxu0 %vm878_vm2, %v3555_v9  ;;  %3115 = vmatmul.mubr.msk.f32.vlgmr.msra.gmra.mxu1 %vm878_vm2, %v3575_v15 }
  0xdf   : > { %v509_v58 = vpop.f32.mrf.mxu0  ;;  %v582_v60 = vpop.f32.mrf.mxu1  ;;  %3117 = vmatprep.subr.mxu0 %v3396_v1  ;;  %3122 = vmatprep.subr.mxu1 %v3396_v1 }
  0xe0   : > { %v937_v61 = vmul.f32 %v3624_v59, %v509_v58  ;;  %v938_v62 = vmul.f32 %v3618_v55, %v582_v60  ;;  %3119 = vmatprep.mubr.msk.f32.mxu0 %vm3397_vm0, %v3396_v1  ;;  %3124 = vmatprep.mubr.msk.f32.mxu1 %vm3397_vm0, %v3396_v1 }
  0xe1   : > { %v3071_v63 = vpop.f32.mrf.mxu0  ;;  %v3078_v0 = vpop.f32.mrf.mxu1 }
  0xe2   : > { %3118 = vmatpush3.msra.mxu0 %v937_v61  ;;  %3123 = vmatpush3.msra.mxu1 %v938_v62 }
  0xe3   : > { %3120 = vmatmul.mubr.msk.f32.vlgmr.msra.gmra.mxu0 %vm878_vm2, %v3558_v10  ;;  %3125 = vmatmul.mubr.msk.f32.vlgmr.msra.gmra.mxu1 %vm878_vm2, %v3578_v16 }
  0xe4   : > { %3127 = vmatprep.subr.mxu0 %v3396_v1  ;;  %3132 = vmatprep.subr.mxu1 %v3396_v1 }
  0xe5   : > { %v655_v6 = vpop.f32.mrf.mxu0  ;;  %v728_v7 = vpop.f32.mrf.mxu1  ;;  %3129 = vmatprep.mubr.msk.f32.mxu0 %vm3397_vm0, %v3396_v1  ;;  %3134 = vmatprep.mubr.msk.f32.mxu1 %vm3397_vm0, %v3396_v1 }
  0xe6   : > { %v939_v8 = vmul.f32 %v3634_v4, %v655_v6  ;;  %v940_v11 = vmul.f32 %v3636_v5, %v728_v7 }
  0xe7   : > { %v3085_v12 = vpop.f32.mrf.mxu0  ;;  %v3092_v13 = vpop.f32.mrf.mxu1 }
  0xe8   : > { %3128 = vmatpush3.msra.mxu0 %v939_v8  ;;  %3133 = vmatpush3.msra.mxu1 %v940_v11 }
  0xe9   : > { %3130 = vmatmul.mubr.msk.f32.vlgmr.msra.gmra.mxu0 %vm878_vm2, %v3592_v20  ;;  %3135 = vmatmul.mubr.msk.f32.vlgmr.msra.gmra.mxu1 %vm878_vm2, %v3589_v19 }
  0xea   : > { %3137 = vmatprep.subr.mxu0 %v3396_v1  ;;  %3142 = vmatprep.subr.mxu1 %v3396_v1 }
  0xeb   : > { %v801_v18 = vpop.f32.mrf.mxu0  ;;  %v874_v21 = vpop.f32.mrf.mxu1  ;;  %3139 = vmatprep.mubr.msk.f32.mxu0 %vm3397_vm0, %v3396_v1  ;;  %3144 = vmatprep.mubr.msk.f32.mxu1 %vm3397_vm0, %v3396_v1 }
  0xec   : > { %v941_v22 = vmul.f32 %v3650_v14, %v801_v18  ;;  %v942_v25 = vmul.f32 %v3652_v17, %v874_v21 }
  0xed   : > { %v3099_v26 = vpop.f32.mrf.mxu0  ;;  %v3106_v27 = vpop.f32.mrf.mxu1 }
  0xee   : > { %3138 = vmatpush3.msra.mxu0 %v941_v22  ;;  %3143 = vmatpush3.msra.mxu1 %v942_v25 }
  0xef   : > { %3140 = vmatmul.mubr.msk.f32.vlgmr.msra.gmra.mxu0 %vm878_vm2, %v3606_v24  ;;  %3145 = vmatmul.mubr.msk.f32.vlgmr.msra.gmra.mxu1 %vm878_vm2, %v3603_v23 }
  0xf0   : > { %3147 = vmatprep.subr.mxu0 %v3396_v1  ;;  %3152 = vmatprep.subr.mxu1 %v3396_v1 }
  0xf1   : > { %3149 = vmatprep.mubr.msk.f32.mxu0 %vm3397_vm0, %v3396_v1  ;;  %3154 = vmatprep.mubr.msk.f32.mxu1 %vm3397_vm0, %v3396_v1 }
 0x19e   : > { %v1012_v28 = vpop.f32.mrf.mxu0  ;;  %v1085_v30 = vpop.f32.mrf.mxu1 }
 0x19f   : > { %v1527_v31 = vmul.f32 %v1012_v28, %v3612_v46  ;;  %v1528_v32 = vmul.f32 %v1085_v30, %v3614_v48 }
 0x1a0   : > { %v3111_v33 = vpop.f32.mrf.mxu0  ;;  %v3116_v34 = vpop.f32.mrf.mxu1 }
 0x1a1   : > { %v1542_v35 = vadd.f32 %v2931_v29, %v1527_v31  ;;  %v1543_v36 = vadd.f32 %v2931_v29, %v1528_v32 }
 0x1a3   : > { %v1550_v37 = vmax.f32 %v1542_v35, 0.0  ;;  %v1551_v38 = vmax.f32 %v1543_v36, 0.0  ;;  %v1158_v39 = vpop.f32.mrf.mxu0  ;;  %v1231_v40 = vpop.f32.mrf.mxu1 }
 0x1a4   : > { %v1529_v41 = vmul.f32 %v1158_v39, %v3624_v59  ;;  %v1530_v42 = vmul.f32 %v1231_v40, %v3618_v55 }
 0x1a5   : > { %v1558_v43 = vmul.f32 %v1550_v37, %v3612_v46  ;;  %v1559_v44 = vmul.f32 %v1551_v38, %v3614_v48  ;;  %v3121_v45 = vpop.f32.mrf.mxu0  ;;  %v3126_v47 = vpop.f32.mrf.mxu1 }
 0x1a6   : > { %v1544_v49 = vadd.f32 %v2931_v29, %v1529_v41  ;;  %v1545_v50 = vadd.f32 %v2931_v29, %v1530_v42 }
 0x1a7   : > { %3148 = vmatpush3.msra.mxu0 %v1558_v43  ;;  %3153 = vmatpush3.msra.mxu1 %v1559_v44 }
 0x1a8   : > { %v1552_v51 = vmax.f32 %v1544_v49, 0.0  ;;  %v1553_v52 = vmax.f32 %v1545_v50, 0.0  ;;  %3150 = vmatmul.mubr.msk.f32.vlgmr.msra.gmra.mxu0 %vm878_vm2, %v3555_v9  ;;  %3155 = vmatmul.mubr.msk.f32.vlgmr.msra.gmra.mxu1 %vm878_vm2, %v3575_v15 }
 0x1a9   : > { %v1304_v53 = vpop.f32.mrf.mxu0  ;;  %v1377_v54 = vpop.f32.mrf.mxu1  ;;  %3157 = vmatprep.subr.mxu0 %v3396_v1  ;;  %3162 = vmatprep.subr.mxu1 %v3396_v1 }
 0x1aa   : > { %v1560_v56 = vmul.f32 %v1552_v51, %v3624_v59  ;;  %v1561_v57 = vmul.f32 %v1553_v52, %v3618_v55  ;;  %v1531_v58 = vmul.f32 %v1304_v53, %v3634_v4  ;;  %v1532_v60 = vmul.f32 %v1377_v54, %v3636_v5  ;;  %3159 = vmatprep.mubr.msk.f32.mxu0 %vm3397_vm0, %v3396_v1 }
 0x1ab   : > { %v3131_v9 = vpop.f32.mrf.mxu0  ;;  %v3136_v61 = vpop.f32.mrf.mxu1  ;;  %3164 = vmatprep.mubr.msk.f32.mxu1 %vm3397_vm0, %v3396_v1 }
 0x1ac   : > { %v1546_v15 = vadd.f32 %v2931_v29, %v1531_v58  ;;  %v1547_v62 = vadd.f32 %v2931_v29, %v1532_v60  ;;  %3158 = vmatpush3.msra.mxu0 %v1560_v56  ;;  %3163 = vmatpush3.msra.mxu1 %v1561_v57 }
 0x1ad   : > { %3160 = vmatmul.mubr.msk.f32.vlgmr.msra.gmra.mxu0 %vm878_vm2, %v3558_v10  ;;  %3165 = vmatmul.mubr.msk.f32.vlgmr.msra.gmra.mxu1 %vm878_vm2, %v3578_v16 }
 0x1ae   : > { %v1554_v63 = vmax.f32 %v1546_v15, 0.0  ;;  %v1555_v0 = vmax.f32 %v1547_v62, 0.0  ;;  %3167 = vmatprep.subr.mxu0 %v3396_v1  ;;  %3172 = vmatprep.subr.mxu1 %v3396_v1 }
 0x1af   : > { %v1450_v2 = vpop.f32.mrf.mxu0  ;;  %v1523_v3 = vpop.f32.mrf.mxu1  ;;  %3169 = vmatprep.mubr.msk.f32.mxu0 %vm3397_vm0, %v3396_v1  ;;  %3174 = vmatprep.mubr.msk.f32.mxu1 %vm3397_vm0, %v3396_v1 }
 0x1b0   : > { %v1562_v6 = vmul.f32 %v1554_v63, %v3634_v4  ;;  %v1563_v10 = vmul.f32 %v1555_v0, %v3636_v5  ;;  %v1533_v16 = vmul.f32 %v1450_v2, %v3650_v14  ;;  %v1534_v7 = vmul.f32 %v1523_v3, %v3652_v17 }
 0x1b1   : > { %v3141_v8 = vpop.f32.mrf.mxu0  ;;  %v3146_v11 = vpop.f32.mrf.mxu1 }
 0x1b2   : > { %v1548_v12 = vadd.f32 %v2931_v29, %v1533_v16  ;;  %v1549_v13 = vadd.f32 %v2931_v29, %v1534_v7  ;;  %3168 = vmatpush3.msra.mxu0 %v1562_v6  ;;  %3173 = vmatpush3.msra.mxu1 %v1563_v10 }
 0x1b3   : > { %3170 = vmatmul.mubr.msk.f32.vlgmr.msra.gmra.mxu0 %vm878_vm2, %v3592_v20  ;;  %3175 = vmatmul.mubr.msk.f32.vlgmr.msra.gmra.mxu1 %vm878_vm2, %v3589_v19  ;;  %v3728_v19 = vld [vmem:[%s3926_s4 + $0x18] sm:$0xff]  ;;  %v3739_v20 = vld [vmem:[%s3926_s4 + $0x10] sm:$0xff] }
 0x1b4   : > { %v1556_v18 = vmax.f32 %v1548_v12, 0.0  ;;  %v1557_v21 = vmax.f32 %v1549_v13, 0.0  ;;  %3177 = vmatprep.subr.mxu0 %v3396_v1  ;;  %3182 = vmatprep.subr.mxu1 %v3396_v1 }
 0x1b5   : > { %3179 = vmatprep.mubr.msk.f32.mxu0 %vm3397_vm0, %v3396_v1  ;;  %3184 = vmatprep.mubr.msk.f32.mxu1 %vm3397_vm0, %v3396_v1 }
 0x1b6   : > { %v1564_v22 = vmul.f32 %v1556_v18, %v3650_v14  ;;  %v1565_v25 = vmul.f32 %v1557_v21, %v3652_v17 }
 0x1b8   : > { %3178 = vmatpush3.msra.mxu0 %v1564_v22  ;;  %3183 = vmatpush3.msra.mxu1 %v1565_v25 }
 0x1b9   : > { %3180 = vmatmul.mubr.msk.f32.vlgmr.msra.gmra.mxu0 %vm878_vm2, %v3606_v24  ;;  %3185 = vmatmul.mubr.msk.f32.vlgmr.msra.gmra.mxu1 %vm878_vm2, %v3603_v23  ;;  %v3748_v23 = vld [vmem:[%s3926_s4 + $0x8] sm:$0xff]  ;;  %v3765_v24 = vld [vmem:[%s3926_s4] sm:$0xff] }
 0x1ba   : > { %3187 = vmatprep.subr.mxu0 %v3396_v1  ;;  %3198 = vmatprep.subr.mxu1 %v3396_v1 }
 0x1bb   : > { %3188 = vmatpush3.msra.mxu0 %v3728_v19  ;;  %3199 = vmatpush3.msra.mxu1 %v3728_v19 }
 0x1bc   : > { %3189 = vmatprep.subr.mxu0 %v3396_v1  ;;  %3200 = vmatprep.subr.mxu1 %v3396_v1 }
 0x1bd   : > { %3190 = vmatpush3.msra.mxu0 %v3739_v20  ;;  %3201 = vmatpush3.msra.mxu1 %v3739_v20 }
 0x1be   : > { %3191 = vmatprep.subr.mxu0 %v3396_v1  ;;  %3202 = vmatprep.subr.mxu1 %v3396_v1 }
 0x1bf   : > { %3192 = vmatpush3.msra.mxu0 %v3748_v23  ;;  %3203 = vmatpush3.msra.mxu1 %v3748_v23 }
 0x1c0   : > { %3193 = vmatprep.subr.mxu0 %v3396_v1  ;;  %3204 = vmatprep.subr.mxu1 %v3396_v1 }
 0x1c1   : > { %3195 = vmatprep.mubr.msk.f32.mxu0 %vm3397_vm0, %v3396_v1  ;;  %3206 = vmatprep.mubr.msk.f32.mxu1 %vm3397_vm0, %v3396_v1 }
 0x1c2   : > { %3194 = vmatpush3.msra.mxu0 %v3765_v24  ;;  %3205 = vmatpush3.msra.mxu1 %v3765_v24 }
 0x1c3   : > { %3209 = vmatprep.subr.mxu0 %v3396_v1  ;;  %3220 = vmatprep.subr.mxu1 %v3396_v1 }
 0x268   : > { %v1632_v26 = vpop.f32.mrf.mxu0  ;;  %v1702_v27 = vpop.f32.mrf.mxu1 }
 0x269   : > { %v2126_v28 = vmul.f32 %v1632_v26, %v3612_v46  ;;  %v2127_v29 = vmul.f32 %v1702_v27, %v3614_v48 }
 0x26a   : > { %v3151_v30 = vpop.f32.mrf.mxu0  ;;  %v3156_v31 = vpop.f32.mrf.mxu1 }
 0x26b   : > { %3196 = vmatmul.mubr.msk.f32.vlgmr.msra.gmra.mxu0 %vm2145_vm11, %v2126_v28  ;;  %3207 = vmatmul.mubr.msk.f32.vlgmr.msra.gmra.mxu1 %vm2145_vm11, %v2127_v29 }
 0x26c   : > { %3210 = vmatpush3.msra.mxu0 %v3728_v19  ;;  %3221 = vmatpush3.msra.mxu1 %v3728_v19 }
 0x26d   : > { %v1772_v32 = vpop.f32.mrf.mxu0  ;;  %v1842_v33 = vpop.f32.mrf.mxu1  ;;  %3211 = vmatprep.subr.mxu0 %v3396_v1  ;;  %3222 = vmatprep.subr.mxu1 %v3396_v1 }
 0x26e   : > { %3212 = vmatpush3.msra.mxu0 %v3739_v20  ;;  %3223 = vmatpush3.msra.mxu1 %v3739_v20  ;;  %v2128_v34 = vmul.f32 %v1772_v32, %v3624_v59  ;;  %v2129_v35 = vmul.f32 %v1842_v33, %v3618_v55 }
 0x26f   : > { %v3161_v46 = vpop.f32.mrf.mxu0  ;;  %v3166_v48 = vpop.f32.mrf.mxu1  ;;  %3213 = vmatprep.subr.mxu0 %v3396_v1  ;;  %3224 = vmatprep.subr.mxu1 %v3396_v1 }
 0x270   : > { %3214 = vmatpush3.msra.mxu0 %v3748_v23  ;;  %3225 = vmatpush3.msra.mxu1 %v3748_v23 }
 0x271   : > { %3215 = vmatprep.subr.mxu0 %v3396_v1  ;;  %3226 = vmatprep.subr.mxu1 %v3396_v1 }
 0x272   : > { %3216 = vmatpush3.msra.mxu0 %v3765_v24  ;;  %3217 = vmatprep.mubr.msk.f32.mxu0 %vm3397_vm0, %v3396_v1 }
 0x273   : > { %v1912_v36 = vpop.f32.mrf.mxu0  ;;  %v1982_v37 = vpop.f32.mrf.mxu1  ;;  %3227 = vmatpush3.msra.mxu1 %v3765_v24  ;;  %3228 = vmatprep.mubr.msk.f32.mxu1 %vm3397_vm0, %v3396_v1 }
 0x274   : > { %3218 = vmatmul.mubr.msk.f32.vlgmr.msra.gmra.mxu0 %vm2145_vm11, %v2128_v34  ;;  %3229 = vmatmul.mubr.msk.f32.vlgmr.msra.gmra.mxu1 %vm2145_vm11, %v2129_v35  ;;  %v2130_v42 = vmul.f32 %v1912_v36, %v3634_v4  ;;  %v2131_v43 = vmul.f32 %v1982_v37, %v3636_v5 }
 0x275   : > { %v3171_v38 = vpop.f32.mrf.mxu0  ;;  %v3176_v59 = vpop.f32.mrf.mxu1  ;;  %3231 = vmatprep.subr.mxu0 %v3396_v1  ;;  %3242 = vmatprep.subr.mxu1 %v3396_v1 }
 0x276   : > { %3232 = vmatpush3.msra.mxu0 %v3728_v19  ;;  %3243 = vmatpush3.msra.mxu1 %v3728_v19 }
 0x277   : > { %3233 = vmatprep.subr.mxu0 %v3396_v1  ;;  %3244 = vmatprep.subr.mxu1 %v3396_v1 }
 0x278   : > { %3234 = vmatpush3.msra.mxu0 %v3739_v20  ;;  %3245 = vmatpush3.msra.mxu1 %v3739_v20 }
 0x279   : > { %v2052_v55 = vpop.f32.mrf.mxu0  ;;  %v2122_v39 = vpop.f32.mrf.mxu1  ;;  %3235 = vmatprep.subr.mxu0 %v3396_v1  ;;  %3246 = vmatprep.subr.mxu1 %v3396_v1 }
 0x27a   : > { %3236 = vmatpush3.msra.mxu0 %v3748_v23  ;;  %3247 = vmatpush3.msra.mxu1 %v3748_v23  ;;  %v2132_v4 = vmul.f32 %v2052_v55, %v3650_v14  ;;  %v2133_v5 = vmul.f32 %v2122_v39, %v3652_v17  ;;  %v3848_v14 = vld [vmem:[%s3927_s5] ss:$0 sm:$0xff] }
 0x27b   : > { %3237 = vmatprep.subr.mxu0 %v3396_v1  ;;  %3248 = vmatprep.subr.mxu1 %v3396_v1  ;;  %v3181_v40 = vpop.f32.mrf.mxu0  ;;  %v3186_v41 = vpop.f32.mrf.mxu1 }
 0x27c   : > { %3238 = vmatpush3.msra.mxu0 %v3765_v24  ;;  %3239 = vmatprep.mubr.msk.f32.mxu0 %vm3397_vm0, %v3396_v1 }
 0x27d   : > { %3249 = vmatpush3.msra.mxu1 %v3765_v24  ;;  %3250 = vmatprep.mubr.msk.f32.mxu1 %vm3397_vm0, %v3396_v1 }
 0x27e   : > { %3240 = vmatmul.mubr.msk.f32.vlgmr.msra.gmra.mxu0 %vm2145_vm11, %v2130_v42  ;;  %3251 = vmatmul.mubr.msk.f32.vlgmr.msra.gmra.mxu1 %vm2145_vm11, %v2131_v43 }
 0x27f   : > { %3253 = vmatprep.subr.mxu0 %v3396_v1  ;;  %3264 = vmatprep.subr.mxu1 %v3396_v1 }
 0x280   : > { %3254 = vmatpush3.msra.mxu0 %v3728_v19  ;;  %3265 = vmatpush3.msra.mxu1 %v3728_v19 }
 0x281   : > { %3255 = vmatprep.subr.mxu0 %v3396_v1  ;;  %3266 = vmatprep.subr.mxu1 %v3396_v1 }
 0x282   : > { %3256 = vmatpush3.msra.mxu0 %v3739_v20  ;;  %3267 = vmatpush3.msra.mxu1 %v3739_v20 }
 0x283   : > { %3257 = vmatprep.subr.mxu0 %v3396_v1  ;;  %3268 = vmatprep.subr.mxu1 %v3396_v1 }
 0x284   : > { %3258 = vmatpush3.msra.mxu0 %v3748_v23  ;;  %3269 = vmatpush3.msra.mxu1 %v3748_v23 }
 0x285   : > { %3259 = vmatprep.subr.mxu0 %v3396_v1  ;;  %3270 = vmatprep.subr.mxu1 %v3396_v1 }
 0x286   : > { %3260 = vmatpush3.msra.mxu0 %v3765_v24  ;;  %3261 = vmatprep.mubr.msk.f32.mxu0 %vm3397_vm0, %v3396_v1 }
 0x287   : > { %3271 = vmatpush3.msra.mxu1 %v3765_v24  ;;  %3272 = vmatprep.mubr.msk.f32.mxu1 %vm3397_vm0, %v3396_v1 }
 0x288   : > { %3262 = vmatmul.mubr.msk.f32.vlgmr.msra.gmra.mxu0 %vm2145_vm11, %v2132_v4  ;;  %3273 = vmatmul.mubr.msk.f32.vlgmr.msra.gmra.mxu1 %vm2145_vm11, %v2133_v5 }
 0x32b   : > { %v2215_v17 = vpop.f32.mrf.mxu0  ;;  %v2288_v44 = vpop.f32.mrf.mxu1 }
 0x32c   : > { %v2216_v45 = vadd.f32 %v3848_v14, %v2215_v17  ;;  %v2289_v47 = vadd.f32 %v3848_v14, %v2288_v44 }
 0x32d   : > { %v3197_v49 = vpop.f32.mrf.mxu0  ;;  %v3208_v50 = vpop.f32.mrf.mxu1 }
 0x32e   : > { %v2730_v51 = vmax.f32 %v2216_v45, 0.0  ;;  %v2731_v1 = vmax.f32 %v2289_v47, 0.0 }
 0x330   : > { %v2746_v52 = vrot.slane %v2730_v51, 1  ;;  %v2747_v53 = vrot.slane %v2731_v1, 1  ;;  %v2778_v58 = vrot.slane %v2730_v51, 2  ;;  %v2779_v9 = vrot.slane %v2731_v1, 2 }
 0x332   : > { %v2762_v54 = vadd.f32 %v2746_v52, %v2730_v51  ;;  %v2763_v56 = vadd.f32 %v2747_v53, %v2731_v1 }
 0x334   : > { %v2770_v57 = vmul.f32 0.5, %v2762_v54  ;;  %v2771_v60 = vmul.f32 0.5, %v2763_v56  ;;  %v2361_v61 = vpop.f32.mrf.mxu0  ;;  %v2434_v15 = vpop.f32.mrf.mxu1 }
 0x335   : > { %v2362_v62 = vadd.f32 %v3848_v14, %v2361_v61  ;;  %v2435_v63 = vadd.f32 %v3848_v14, %v2434_v15 }
 0x336   : > { %v2794_v0 = vadd.f32 %v2778_v58, %v2770_v57  ;;  %v2795_v2 = vadd.f32 %v2779_v9, %v2771_v60  ;;  %v3219_v3 = vpop.f32.mrf.mxu0  ;;  %v3230_v6 = vpop.f32.mrf.mxu1 }
 0x337   : > { %v2732_v10 = vmax.f32 %v2362_v62, 0.0  ;;  %v2733_v16 = vmax.f32 %v2435_v63, 0.0 }
 0x338   : > { %v2802_v7 = vmul.f32 0.5, %v2794_v0  ;;  %v2803_v8 = vmul.f32 0.5, %v2795_v2 }
 0x339   : > { %v2748_v11 = vrot.slane %v2732_v10, 1  ;;  %v2749_v12 = vrot.slane %v2733_v16, 1  ;;  %v2780_v22 = vrot.slane %v2732_v10, 2  ;;  %v2781_v19 = vrot.slane %v2733_v16, 2 }
 0x33a   : > { %2810 = vst [vmem:[%s3857_s20] sm:$0x1] %v2802_v7  ;;  %2811 = vst [vmem:[%s3857_s20 + $0x1] sm:$0x1] %v2803_v8 }
 0x33b   : > { %v2764_v13 = vadd.f32 %v2748_v11, %v2732_v10  ;;  %v2765_v18 = vadd.f32 %v2749_v12, %v2733_v16 }
 0x33d   : > { %v2772_v21 = vmul.f32 0.5, %v2764_v13  ;;  %v2773_v25 = vmul.f32 0.5, %v2765_v18 }
 0x33e   : > { %v2507_v20 = vpop.f32.mrf.mxu0  ;;  %v2580_v23 = vpop.f32.mrf.mxu1 }
 0x33f   : > { %v2796_v24 = vadd.f32 %v2780_v22, %v2772_v21  ;;  %v2797_v26 = vadd.f32 %v2781_v19, %v2773_v25  ;;  %v2508_v27 = vadd.f32 %v3848_v14, %v2507_v20  ;;  %v2581_v28 = vadd.f32 %v3848_v14, %v2580_v23 }
 0x340   : > { %v3241_v29 = vpop.f32.mrf.mxu0  ;;  %v3252_v30 = vpop.f32.mrf.mxu1 }
 0x341   : > { %v2804_v31 = vmul.f32 0.5, %v2796_v24  ;;  %v2805_v32 = vmul.f32 0.5, %v2797_v26  ;;  %v2734_v33 = vmax.f32 %v2508_v27, 0.0  ;;  %v2735_v46 = vmax.f32 %v2581_v28, 0.0 }
 0x343   : > { %2812 = vst [vmem:[%s3857_s20 + $0x2] sm:$0x1] %v2804_v31  ;;  %2813 = vst [vmem:[%s3857_s20 + $0x3] sm:$0x1] %v2805_v32  ;;  %v2750_v48 = vrot.slane %v2734_v33, 1  ;;  %v2751_v34 = vrot.slane %v2735_v46, 1 }
 0x344   : > { %v2782_v38 = vrot.slane %v2734_v33, 2  ;;  %v2783_v55 = vrot.slane %v2735_v46, 2 }
 0x345   : > { %v2766_v35 = vadd.f32 %v2750_v48, %v2734_v33  ;;  %v2767_v36 = vadd.f32 %v2751_v34, %v2735_v46 }
 0x347   : > { %v2774_v37 = vmul.f32 0.5, %v2766_v35  ;;  %v2775_v59 = vmul.f32 0.5, %v2767_v36 }
 0x348   : > { %v2653_v39 = vpop.f32.mrf.mxu0  ;;  %v2726_v40 = vpop.f32.mrf.mxu1 }
 0x349   : > { %v2798_v41 = vadd.f32 %v2782_v38, %v2774_v37  ;;  %v2799_v42 = vadd.f32 %v2783_v55, %v2775_v59  ;;  %v2654_v43 = vadd.f32 %v3848_v14, %v2653_v39  ;;  %v2727_v4 = vadd.f32 %v3848_v14, %v2726_v40 }
 0x34a   : > { %v3263_v5 = vpop.f32.mrf.mxu0  ;;  %v3274_v17 = vpop.f32.mrf.mxu1 }
 0x34b   : > { %v2806_v44 = vmul.f32 0.5, %v2798_v41  ;;  %v2807_v45 = vmul.f32 0.5, %v2799_v42  ;;  %v2736_v47 = vmax.f32 %v2654_v43, 0.0  ;;  %v2737_v49 = vmax.f32 %v2727_v4, 0.0 }
 0x34d   : > { %2814 = vst [vmem:[%s3857_s20 + $0x4] sm:$0x1] %v2806_v44  ;;  %2815 = vst [vmem:[%s3857_s20 + $0x5] sm:$0x1] %v2807_v45  ;;  %v2752_v50 = vrot.slane %v2736_v47, 1  ;;  %v2753_v51 = vrot.slane %v2737_v49, 1 }
 0x34e   : > { %v2784_v54 = vrot.slane %v2736_v47, 2  ;;  %v2785_v56 = vrot.slane %v2737_v49, 2 }
 0x34f   : > { %v2768_v1 = vadd.f32 %v2752_v50, %v2736_v47  ;;  %v2769_v52 = vadd.f32 %v2753_v51, %v2737_v49 }
 0x351   : > { %v2776_v53 = vmul.f32 0.5, %v2768_v1  ;;  %v2777_v14 = vmul.f32 0.5, %v2769_v52 }
 0x353   : > { %v2800_v57 = vadd.f32 %v2784_v54, %v2776_v53  ;;  %v2801_v58 = vadd.f32 %v2785_v56, %v2777_v14 }
 0x355   : > { %v2808_v60 = vmul.f32 0.5, %v2800_v57  ;;  %v2809_v9 = vmul.f32 0.5, %v2801_v58 }
 0x357   : > { %2816 = vst [vmem:[%s3857_s20 + $0x6] sm:$0x1] %v2808_v60  ;;  %2817 = vst [vmem:[%s3857_s20 + $0x7] sm:$0x1] %v2809_v9 }
 0x358   : > { %3347 = shalt.err (!%p3344_p3)
}
 0x359   : > { %s3348_s15 = scalar_lea.hbm %s3874_s10, 128  ;;  %s3352_s18 = scalar_lea.hbm %s3928_s6, 256 }
 0x35a   : > { %p3349_p4 = scmp.ne.s32.totalorder %s3874_s10, %s3348_s15  ;;  %p3353_p9 = scmp.lt.s32.totalorder %s3874_s10, %s3928_s6 }
 0x35b   : > { %p3354_p10 = scmp.lt.s32.totalorder %s3352_s18, %s3348_s15 }
 0x35c   : > { %p3350_p7 = pnand %p3349_p4, %p3474_p5 }
 0x35d   : > { %p3355_p11 = por %p3354_p10, %p3353_p9 }
 0x35e   : > { %p3351_p8 = pneg %p3350_p7 }
 0x360   : > { %p3356_p12 = pnand %p3355_p11, %p3351_p8 }
 0x362   : > { %3359 = shalt.err (!%p3356_p12)
}
 0x363   : > { %s3399_s26 = smov 16   ;;  %s3400_s29 = smov 1  }
 0x364   : > { %3275 = dma.vmem_to_hbm [thread:$0]  (%p3474_p5), %s3876_s28, 128, %s3874_s10, %s3882_s11, %s3399_s26, %s3399_s26, %s3400_s29  }
 0x365 PF: > { %p3281_p13 = scmp.ge.s32.totalorder %s3394_s24, 2  ;;  %s2847_s9 = sand.u32 1, %s3382_s21  }
 0x366   : > { %s2848_s25 = scalar_lea.sflag [#allocation3], %s2847_s9 }
 0x367   : > { %p3278_p0 = pnand %p3281_p13, %p3478_p6 }
 0x369   : > { %p3279_p1 = pneg %p3278_p0 }
 0x36b   : > { %3377 = dma.done.wait (%p3279_p1), %s2848_s25, 128  }
 0x36c   : > { %3379 = vsyncadd (%p3279_p1), %s2848_s25, 4294967168  ;;  %p16_p2 = scmp.ge.s32.totalorder %s3461_s27, 4   ;;  %s3931_s21 = smov %s3386_s22 }
 0x36d   : > { %s3932_s22 = smov %s3390_s23  ;;  %s3933_s23 = smov %s3472_s30 }
 0x36e   : > { %s3934_s24 = smov %s3461_s27  ;;  %18 = sbr.rel (!%p16_p2) target bundleno = 3 (0x3), region = 82 }
 0x373   :  { %2853 = vsyncpa [#allocation3], 1 }
 0x374   :  { %2855 = vsyncpa [#allocation3 + $0x1], 1 }

</bundles_post_ra>
